<compile_context>
chip_gen: v7x
topology: tpu7x:2x2x1
jax: 0.10.0
libtpu: 0.0.40
codegen_flags: <defaults>
</compile_context>

<pallas_src>
import functools

import jax
import jax.numpy as jnp
from jax.experimental import pallas as pl
from jax.experimental.pallas import tpu as pltpu

_LN_EPS = 1e-5


def _gelu_tanh(x):
    # tanh-approximate GELU.
    # TODO(synk): PyTorch nn.GELU() default is erf-exact; tanh approximation used for robust
    #             Mosaic lowering (reference below uses the same formula).
    c = 0.7978845608028654  # sqrt(2/pi)
    return 0.5 * x * (1.0 + jnp.tanh(c * (x + 0.044715 * x * x * x)))


def _extract_patches(x, patch):
    """(B, C, H, W) -> (B, num_patches, C*patch*patch), matching Conv2d(k=s=patch) unfold order."""
    B, C, H, W = x.shape
    hp, wp = H // patch, W // patch
    x = x.reshape(B, C, hp, patch, wp, patch)
    x = x.transpose(0, 2, 4, 1, 3, 5)          # (B, hp, wp, C, P, P)
    return x.reshape(B, hp * wp, C * patch * patch)


# ----------------------------------------------------------------------------
# 1. patch embedding kernel
# ----------------------------------------------------------------------------
def _patch_embed_kernel(p_ref, wp_ref, bp_ref, wl_ref, bl_ref, pos_ref, out_ref):
    h = jnp.dot(p_ref[...], wp_ref[...], preferred_element_type=jnp.float32) + bp_ref[...]
    y = jnp.dot(h, wl_ref[...], preferred_element_type=jnp.float32) + bl_ref[...]
    out_ref[...] = (y + pos_ref[...]).astype(out_ref.dtype)


def patch_embedding(patches, w_proj, b_proj, w_lin, b_lin, pos):
    B, Np, K = patches.shape
    D = w_proj.shape[1]
    return pl.pallas_call(
        _patch_embed_kernel,
        out_shape=jax.ShapeDtypeStruct((B, Np, D), patches.dtype),
        grid_spec=pltpu.PrefetchScalarGridSpec(
            num_scalar_prefetch=0,
            grid=(B,),
            in_specs=[
                pl.BlockSpec((pl.Squeezed(), Np, K), lambda b: (b, 0, 0)),
                pl.BlockSpec((K, D), lambda b: (0, 0)),
                pl.BlockSpec((1, D), lambda b: (0, 0)),
                pl.BlockSpec((D, D), lambda b: (0, 0)),
                pl.BlockSpec((1, D), lambda b: (0, 0)),
                pl.BlockSpec((Np, D), lambda b: (0, 0)),
            ],
            out_specs=pl.BlockSpec((pl.Squeezed(), Np, D), lambda b: (b, 0, 0)),
        ),
        compiler_params=pltpu.CompilerParams(dimension_semantics=("parallel",)),
    )(patches, w_proj, b_proj, w_lin, b_lin, pos)


# ----------------------------------------------------------------------------
# 2. fused encoder block kernel (LN1 -> MHA -> +res -> LN2 -> FF -> +res)
# ----------------------------------------------------------------------------
def _encoder_kernel(num_heads, head_dims,
                    x_ref, g1_ref, be1_ref,
                    wqkv_ref, bqkv_ref, wo_ref, bo_ref,
                    g2_ref, be2_ref, w1_ref, b1_ref, w2_ref, b2_ref,
                    out_ref, z_ref):
    x = x_ref[...]                               # (S, D)
    D = x.shape[-1]

    # ---- LayerNorm 1 ----
    mu = jnp.mean(x, axis=-1, keepdims=True)
    xc = x - mu
    var = jnp.mean(xc * xc, axis=-1, keepdims=True)
    xn = xc * jax.lax.rsqrt(var + _LN_EPS) * g1_ref[...] + be1_ref[...]

    # ---- multi-head self-attention with fused QKV projection ----
    qkv = jnp.dot(xn, wqkv_ref[...], preferred_element_type=jnp.float32) + bqkv_ref[...]
    inv_den = 1.0 / (float(head_dims) ** 0.5)

    # TODO(synk): optional mask / key_padding_mask branches are not exercised (mask=None path);
    #             they would be a jnp.where on `s` before the softmax.
    for h in range(num_heads):
        lo = h * head_dims
        hi = lo + head_dims
        qh = qkv[:, lo:hi] * inv_den                     # scale folded into q once
        kh = qkv[:, D + lo:D + hi]
        vh = qkv[:, 2 * D + lo:2 * D + hi]
        # contract last dims directly -> no materialized kh.T
        s = jax.lax.dot_general(qh, kh, (((1,), (1,)), ((), ())),
                                preferred_element_type=jnp.float32)       # (S, S)
        s_max = jnp.max(s, axis=-1, keepdims=True)
        p = jnp.exp(s - s_max)
        p = p * pl.reciprocal(jnp.sum(p, axis=-1, keepdims=True), approx=True)
        # head output lands at a static, lane-aligned column offset of the scratch slab
        z_ref[:, lo:hi] = jnp.dot(p, vh, preferred_element_type=jnp.float32)

    attn = jnp.dot(z_ref[...], wo_ref[...], preferred_element_type=jnp.float32) + bo_ref[...]
    x = x + attn                                   # residual 1 (dropout = identity at inference)

    # ---- LayerNorm 2 ----
    mu2 = jnp.mean(x, axis=-1, keepdims=True)
    xc2 = x - mu2
    var2 = jnp.mean(xc2 * xc2, axis=-1, keepdims=True)
    xn2 = xc2 * jax.lax.rsqrt(var2 + _LN_EPS) * g2_ref[...] + be2_ref[...]

    # ---- FeedForward: fc1 -> GELU -> fc2 ----
    h1 = jnp.dot(xn2, w1_ref[...], preferred_element_type=jnp.float32) + b1_ref[...]
    h1 = _gelu_tanh(h1)
    h2 = jnp.dot(h1, w2_ref[...], preferred_element_type=jnp.float32) + b2_ref[...]
    out_ref[...] = (x + h2).astype(out_ref.dtype)  # residual 2


def encoder_block(x, layer, num_heads):
    B, S, D = x.shape
    F = layer["w1"].shape[1]
    head_dims = D // num_heads

    x_spec = pl.BlockSpec((pl.Squeezed(), S, D), lambda b: (b, 0, 0))
    vec_d = pl.BlockSpec((1, D), lambda b: (0, 0))
    kernel = functools.partial(_encoder_kernel, num_heads, head_dims)

    return pl.pallas_call(
        kernel,
        out_shape=jax.ShapeDtypeStruct((B, S, D), x.dtype),
        grid_spec=pltpu.PrefetchScalarGridSpec(
            num_scalar_prefetch=0,
            grid=(B,),
            in_specs=[
                x_spec,
                vec_d, vec_d,                                    # ln1 gamma / beta
                pl.BlockSpec((D, 3 * D), lambda b: (0, 0)),      # fused Wqkv
                pl.BlockSpec((1, 3 * D), lambda b: (0, 0)),      # fused bqkv
                pl.BlockSpec((D, D), lambda b: (0, 0)), vec_d,   # Wo, bo
                vec_d, vec_d,                                    # ln2 gamma / beta
                pl.BlockSpec((D, F), lambda b: (0, 0)),          # W1
                pl.BlockSpec((1, F), lambda b: (0, 0)),          # b1
                pl.BlockSpec((F, D), lambda b: (0, 0)), vec_d,   # W2, b2
            ],
            out_specs=x_spec,
            scratch_shapes=[pltpu.VMEM((S, D), jnp.float32)],    # head-concat accumulator
        ),
        compiler_params=pltpu.CompilerParams(
            dimension_semantics=("parallel",),
            vmem_limit_bytes=32 * 1024 * 1024,
        ),
    )(x, layer["ln1_g"], layer["ln1_b"],
      layer["wqkv"], layer["bqkv"], layer["wo"], layer["bo"],
      layer["ln2_g"], layer["ln2_b"],
      layer["w1"], layer["b1"], layer["w2"], layer["b2"])


# ----------------------------------------------------------------------------
# 3. mean-pool over sequence + classifier head
# ----------------------------------------------------------------------------
def _pool_head_kernel(x_ref, wh_ref, bh_ref, out_ref):
    pooled = jnp.mean(x_ref[...], axis=0, keepdims=True)                      # (1, D)
    out = jnp.dot(pooled, wh_ref[...], preferred_element_type=jnp.float32) + bh_ref[...]
    out_ref[...] = out.astype(out_ref.dtype)


def pool_and_head(x, wh, bh):
    B, S, D = x.shape
    C = wh.shape[1]
    out = pl.pallas_call(
        _pool_head_kernel,
        out_shape=jax.ShapeDtypeStruct((B, 1, C), x.dtype),
        grid_spec=pltpu.PrefetchScalarGridSpec(
            num_scalar_prefetch=0,
            grid=(B,),
            in_specs=[
                pl.BlockSpec((pl.Squeezed(), S, D), lambda b: (b, 0, 0)),
                pl.BlockSpec((D, C), lambda b: (0, 0)),
                pl.BlockSpec((1, C), lambda b: (0, 0)),
            ],
            out_specs=pl.BlockSpec((pl.Squeezed(), 1, C), lambda b: (b, 0, 0)),
        ),
        compiler_params=pltpu.CompilerParams(dimension_semantics=("parallel",)),
    )(x, wh, bh)
    return out.reshape(B, C)


# ----------------------------------------------------------------------------
# full ViT forward (Pallas path)
# ----------------------------------------------------------------------------
def vit_forward(x, params, *, patch_size, num_heads):
    B = x.shape[0]
    patches = _extract_patches(x, patch_size)                  # (B, Np, C*P*P)
    Np = patches.shape[1]
    D = params["w_proj"].shape[1]

    y = patch_embedding(patches, params["w_proj"], params["b_proj"],
                        params["w_lin"], params["b_lin"],
                        params["pos"][:Np])                    # pos-add fused in-kernel
    cls = jnp.broadcast_to(params["cls"], (B, 1, D))
    y = jnp.concatenate([y, cls], axis=1)                      # cls appended at END (matches ViT.py)
    # embedding dropout: identity at inference
    for layer in params["layers"]:
        y = encoder_block(y, layer, num_heads)
    return pool_and_head(y, params["w_head"], params["b_head"])


# ----------------------------------------------------------------------------
# plain-JAX reference mirroring the PyTorch forward (same param layout)
# ----------------------------------------------------------------------------
def _layernorm(x, g, b):
    mu = x.mean(axis=-1, keepdims=True)
    var = ((x - mu) ** 2).mean(axis=-1, keepdims=True)
    return (x - mu) / jnp.sqrt(var + _LN_EPS) * g + b


def _reference_encoder(x, layer, num_heads):
    B, S, D = x.shape
    Dh = D // num_heads
    xn = _layernorm(x, layer["ln1_g"], layer["ln1_b"])
    qkv = xn @ layer["wqkv"] + layer["bqkv"]
    q, k, v = qkv[..., :D], qkv[..., D:2 * D], qkv[..., 2 * D:]

    def rearr(t):
        return t.reshape(B, S, num_heads, Dh).transpose(0, 2, 1, 3)

    q, k, v = rearr(q), rearr(k), rearr(v)
    wgt = (q @ k.transpose(0, 1, 3, 2)) / (Dh ** 0.5)
    wgt = jax.nn.softmax(wgt, axis=-1)
    z = (wgt @ v).transpose(0, 2, 1, 3).reshape(B, S, D)
    x = x + (z @ layer["wo"] + layer["bo"])
    xn2 = _layernorm(x, layer["ln2_g"], layer["ln2_b"])
    h = _gelu_tanh(xn2 @ layer["w1"] + layer["b1"])
    return x + (h @ layer["w2"] + layer["b2"])


def _reference_vit(x, params, *, patch_size, num_heads):
    B = x.shape[0]
    patches = _extract_patches(x, patch_size)
    Np = patches.shape[1]
    D = params["w_proj"].shape[1]
    y = patches @ params["w_proj"] + params["b_proj"]
    y = y @ params["w_lin"] + params["b_lin"]
    y = y + params["pos"][None, :Np, :]
    cls = jnp.broadcast_to(params["cls"], (B, 1, D))
    y = jnp.concatenate([y, cls], axis=1)
    for layer in params["layers"]:
        y = _reference_encoder(y, layer, num_heads)
    pooled = y.mean(axis=1)
    return pooled @ params["w_head"] + params["b_head"]


if __name__ == "__main__":
    # Small but lane-dense shapes (d_model multiple of 128, head_dim = 128).
    B, C_IN, IMG, P = 2, 3, 32, 8
    D, H, F, L, NUM_CLASSES = 256, 2, 512, 2, 10
    MAX_SEQ = 64

    Np = (IMG // P) ** 2           # 16 patches
    K = C_IN * P * P               # 192 features per patch

    root = jax.random.PRNGKey(0)
    keys = iter(jax.random.split(root, 64))

    def uinit(key, shape, fan_in):
        bound = 1.0 / (fan_in ** 0.5)
        return jax.random.uniform(key, shape, jnp.float32, -bound, bound)

    # Weights stored pre-transposed (in, out); Wq|Wk|Wv concatenated along the output axis.
    layers = []
    for _ in range(L):
        layers.append({
            "ln1_g": 1.0 + 0.1 * jax.random.normal(next(keys), (1, D), jnp.float32),
            "ln1_b": 0.1 * jax.random.normal(next(keys), (1, D), jnp.float32),
            "wqkv": uinit(next(keys), (D, 3 * D), D),
            "bqkv": uinit(next(keys), (1, 3 * D), D),
            "wo":   uinit(next(keys), (D, D), D),
            "bo":   uinit(next(keys), (1, D), D),
            "ln2_g": 1.0 + 0.1 * jax.random.normal(next(keys), (1, D), jnp.float32),
            "ln2_b": 0.1 * jax.random.normal(next(keys), (1, D), jnp.float32),
            "w1": uinit(next(keys), (D, F), D),
            "b1": uinit(next(keys), (1, F), D),
            "w2": uinit(next(keys), (F, D), F),
            "b2": uinit(next(keys), (1, D), F),
        })

    params = {
        "w_proj": uinit(next(keys), (K, D), K),   # Conv2d(k=s=P) weight, flattened & transposed
        "b_proj": uinit(next(keys), (1, D), K),
        "w_lin":  uinit(next(keys), (D, D), D),
        "b_lin":  uinit(next(keys), (1, D), D),
        "pos":    0.02 * jax.random.normal(next(keys), (MAX_SEQ, D), jnp.float32),
        "cls":    0.02 * jax.random.normal(next(keys), (1, 1, D), jnp.float32),
        "w_head": uinit(next(keys), (D, NUM_CLASSES), D),
        "b_head": uinit(next(keys), (1, NUM_CLASSES), D),
        "layers": layers,
    }

    x = jax.random.normal(next(keys), (B, C_IN, IMG, IMG), jnp.float32)

    out = vit_forward(x, params, patch_size=P, num_heads=H)
    out = jax.block_until_ready(out)

    ref = _reference_vit(x, params, patch_size=P, num_heads=H)
    assert out.shape == (B, NUM_CLASSES)
    max_err = float(jnp.max(jnp.abs(out - ref)))
    # Tolerance accounts for the approximate (EUP) reciprocal in the softmax denominator.
    assert jnp.allclose(out, ref, atol=2e-2, rtol=2e-2), f"mismatch vs reference, max|d|={max_err}"

    print("KERNEL_OK")
</pallas_src>

<mosaic_0001>
module attributes {stable_mosaic.version = 11 : i64} {
  func.func @_patch_embed_kernel(%arg0: i32, %arg1: memref<1x16x192xf32, #tpu.memory_space<vmem>>, %arg2: memref<192x256xf32, #tpu.memory_space<vmem>>, %arg3: memref<1x256xf32, #tpu.memory_space<vmem>>, %arg4: memref<256x256xf32, #tpu.memory_space<vmem>>, %arg5: memref<1x256xf32, #tpu.memory_space<vmem>>, %arg6: memref<16x256xf32, #tpu.memory_space<vmem>>, %arg7: memref<1x16x256xf32, #tpu.memory_space<vmem>>) attributes {dimension_semantics = [#tpu.dimension_semantics<parallel>], iteration_bounds = array<i64: 2>, scalar_prefetch = 0 : i64, scratch_operands = 0 : i64, tpu.core_type = #tpu.core_type<tc>, window_params = [{transform_indices = @transform_0, window_bounds = array<i64: 1, 16, 192>}, {pipeline_mode = #tpu.pipeline_mode<synchronous>, transform_indices = @transform_1, window_bounds = array<i64: 192, 256>}, {pipeline_mode = #tpu.pipeline_mode<synchronous>, transform_indices = @transform_2, window_bounds = array<i64: 1, 256>}, {pipeline_mode = #tpu.pipeline_mode<synchronous>, transform_indices = @transform_3, window_bounds = array<i64: 256, 256>}, {pipeline_mode = #tpu.pipeline_mode<synchronous>, transform_indices = @transform_4, window_bounds = array<i64: 1, 256>}, {pipeline_mode = #tpu.pipeline_mode<synchronous>, transform_indices = @transform_5, window_bounds = array<i64: 16, 256>}, {transform_indices = @transform_6, window_bounds = array<i64: 1, 16, 256>}]} {
    %c0 = arith.constant 0 : index
    %c0_0 = arith.constant 0 : index
    %c0_1 = arith.constant 0 : index
    %0 = vector.load %arg1[%c0, %c0_0, %c0_1] : memref<1x16x192xf32, #tpu.memory_space<vmem>>, vector<1x16x192xf32>
    %1 = vector.shape_cast %0 : vector<1x16x192xf32> to vector<16x192xf32>
    %c0_2 = arith.constant 0 : index
    %c0_3 = arith.constant 0 : index
    %2 = vector.load %arg2[%c0_2, %c0_3] : memref<192x256xf32, #tpu.memory_space<vmem>>, vector<192x256xf32>
    %cst = arith.constant dense<0.000000e+00> : vector<16x256xf32>
    %3 = tpu.matmul %1, %2, %cst {dimension_numbers = #tpu.dot_dimension_numbers<[1], [0], [0], [1], [0, 0, 1, 1], [], []>} : vector<16x192xf32>, vector<192x256xf32>, vector<16x256xf32> -> vector<16x256xf32>
    %c0_4 = arith.constant 0 : index
    %c0_5 = arith.constant 0 : index
    %4 = vector.load %arg3[%c0_4, %c0_5] : memref<1x256xf32, #tpu.memory_space<vmem>>, vector<1x256xf32>
    %5 = vector.broadcast %4 : vector<1x256xf32> to vector<16x256xf32>
    %6 = arith.addf %3, %5 : vector<16x256xf32>
    %c0_6 = arith.constant 0 : index
    %c0_7 = arith.constant 0 : index
    %7 = vector.load %arg4[%c0_6, %c0_7] : memref<256x256xf32, #tpu.memory_space<vmem>>, vector<256x256xf32>
    %cst_8 = arith.constant dense<0.000000e+00> : vector<16x256xf32>
    %8 = tpu.matmul %6, %7, %cst_8 {dimension_numbers = #tpu.dot_dimension_numbers<[1], [0], [0], [1], [0, 0, 1, 1], [], []>} : vector<16x256xf32>, vector<256x256xf32>, vector<16x256xf32> -> vector<16x256xf32>
    %c0_9 = arith.constant 0 : index
    %c0_10 = arith.constant 0 : index
    %9 = vector.load %arg5[%c0_9, %c0_10] : memref<1x256xf32, #tpu.memory_space<vmem>>, vector<1x256xf32>
    %10 = vector.broadcast %9 : vector<1x256xf32> to vector<16x256xf32>
    %11 = arith.addf %8, %10 : vector<16x256xf32>
    %c0_11 = arith.constant 0 : index
    %c0_12 = arith.constant 0 : index
    %12 = vector.load %arg6[%c0_11, %c0_12] : memref<16x256xf32, #tpu.memory_space<vmem>>, vector<16x256xf32>
    %13 = arith.addf %11, %12 : vector<16x256xf32>
    %c0_13 = arith.constant 0 : index
    %c0_14 = arith.constant 0 : index
    %c0_15 = arith.constant 0 : index
    %14 = vector.load %arg7[%c0_13, %c0_14, %c0_15] : memref<1x16x256xf32, #tpu.memory_space<vmem>>, vector<1x16x256xf32>
    %15 = vector.shape_cast %14 : vector<1x16x256xf32> to vector<16x256xf32>
    %16 = vector.shape_cast %13 : vector<16x256xf32> to vector<1x16x256xf32>
    tpu.vector_store %arg7[%c0_13, %c0_14, %c0_15], %16 {strides = array<i32>} : memref<1x16x256xf32, #tpu.memory_space<vmem>>, vector<1x16x256xf32>,
    return
  }
  func.func @transform_0(%arg0: i32) -> (i32, i32, i32) {
    %c0_i32 = arith.constant 0 : i32
    %c0_i32_0 = arith.constant 0 : i32
    %c0_i32_1 = arith.constant 0 : i32
    return %arg0, %c0_i32, %c0_i32_0 : i32, i32, i32
  }
  func.func @transform_1(%arg0: i32) -> (i32, i32) {
    %c0_i32 = arith.constant 0 : i32
    %c0_i32_0 = arith.constant 0 : i32
    %c0_i32_1 = arith.constant 0 : i32
    return %c0_i32, %c0_i32_0 : i32, i32
  }
  func.func @transform_2(%arg0: i32) -> (i32, i32) {
    %c0_i32 = arith.constant 0 : i32
    %c0_i32_0 = arith.constant 0 : i32
    %c0_i32_1 = arith.constant 0 : i32
    return %c0_i32, %c0_i32_0 : i32, i32
  }
  func.func @transform_3(%arg0: i32) -> (i32, i32) {
    %c0_i32 = arith.constant 0 : i32
    %c0_i32_0 = arith.constant 0 : i32
    %c0_i32_1 = arith.constant 0 : i32
    return %c0_i32, %c0_i32_0 : i32, i32
  }
  func.func @transform_4(%arg0: i32) -> (i32, i32) {
    %c0_i32 = arith.constant 0 : i32
    %c0_i32_0 = arith.constant 0 : i32
    %c0_i32_1 = arith.constant 0 : i32
    return %c0_i32, %c0_i32_0 : i32, i32
  }
  func.func @transform_5(%arg0: i32) -> (i32, i32) {
    %c0_i32 = arith.constant 0 : i32
    %c0_i32_0 = arith.constant 0 : i32
    %c0_i32_1 = arith.constant 0 : i32
    return %c0_i32, %c0_i32_0 : i32, i32
  }
  func.func @transform_6(%arg0: i32) -> (i32, i32, i32) {
    %c0_i32 = arith.constant 0 : i32
    %c0_i32_0 = arith.constant 0 : i32
    %c0_i32_1 = arith.constant 0 : i32
    return %arg0, %c0_i32, %c0_i32_0 : i32, i32, i32
  }
}

</mosaic_0001>

<bundles_post_ra>
// kernel: tpu_custom_call.1
= control target key start
LH: loop header
LB: loop body
LE: loop exit
PB: predicated region body
PF: predicated region fallthrough
CT: control target
= control target key end

     0   :  { %11 = vsyncpa [#allocation3], 0  ;;  %s1483_s0 = inlined_call_operand.hbm [shape: f32[2,16,192], index: 0, kind: input, shape index: {}]   ;;  %s1484_s1 = inlined_call_operand.hbm [shape: f32[192,256], index: 1, kind: input, shape index: {}]   ;;  %s1485_s2 = inlined_call_operand.vmem [shape: f32[1,256], index: 2, kind: input, shape index: {}]   ;;  %s1486_s3 = inlined_call_operand.hbm [shape: f32[256,256], index: 3, kind: input, shape index: {}]   ;;  %s1487_s4 = inlined_call_operand.vmem [shape: f32[1,256], index: 4, kind: input, shape index: {}]   ;;  %s1488_s5 = inlined_call_operand.hbm [shape: f32[16,256], index: 5, kind: input, shape index: {}]   ;;  %s1489_s6 = inlined_call_operand.hbm [shape: f32[2,16,256], index: 6, kind: output, shape index: {}]  }
   0x1   :  { %13 = vsyncpa [#allocation3 + $0x1], 0 }
   0x2   :  { %14 = vsyncpa [#allocation6], 0 }
   0x3   :  { %15 = vsyncpa [#allocation9], 0 }
   0x4   :  { %16 = vsyncpa [#allocation4], 0 }
   0x5   :  { %18 = vsyncpa [#allocation4 + $0x1], 0  ;;  %s1194_s21 = smov 0   ;;  %s1196_s22 = smov 0  }
   0x6   :  { %s1198_s23 = smov 0   ;;  %s1200_s24 = smov 0  }
   0x7 LB: > { %s1215_s25 = sadd.s32 4294967295, %s1148_s24   ;;  %s743_s26 = sadd.s32 4294967294, %s1148_s24   ;;  %s1148_s24 = sphi %s1200_s24, %s1512_s24   ;;  %s1144_s23 = sphi %s1198_s23, %s1511_s23   ;;  %s1140_s22 = sphi %s1196_s22, %s1510_s22   ;;  %s1136_s21 = sphi %s1194_s21, %s1509_s21  }
   0x8   : > { %p44_p0 = scmp.ne.s32.totalorder %s1140_s22, %s1136_s21  ;;  %p1490_p1 = scmp.eq.s32.totalorder %s1215_s25, 0 }
   0x9   : > { %p179_p3 = scmp.eq.s32.totalorder %s743_s26, 1  ;;  %p744_p5 = scmp.ge.s32.totalorder %s1148_s24, 1 }
   0xa   : > { %p1224_p4 = por %p1490_p1, %p44_p0  ;;  %p186_p7 = scmp.lt.s32.totalorder %s1148_s24, 3 }
   0xb   : > { %p1229_p6 = por %p179_p3, %p44_p0  ;;  %s1150_s30 = smov [#allocation5]  }
   0xc   : > { %s1493_s27 = scalar_select %p1224_p4, 1, 0 }
   0xd   : > { %s1494_s28 = scalar_select %p1229_p6, 1, 0 }
   0xe   : > { %p1234_p8 = pnand %p744_p5, %p186_p7  ;;  %s198_s7 = sshll.u32 %s1150_s30, 4  ;;  %s1238_s7 = int_to_ptr.vmem [resolvable:$true] %s198_s7 }
   0xf   : > { %s1151_s9 = smov [#allocation7]   ;;  %s1152_s11 = smov [#allocation8]  }
  0x10   : > { %s1495_s29 = scalar_select %p1234_p8, 1, 0 }
  0x11   : > { %p895_p9 = pneg %p1234_p8  ;;  %s214_s10 = sshll.u32 %s1151_s9, 4  ;;  %s1249_s10 = int_to_ptr.vmem [resolvable:$true] %s214_s10 }
  0x12   : > { %s1251_s12 = sshll.u32 %s1152_s11, 4  ;;  %s960_s15 = scalar_lea.hbm %s1484_s1, 6144  ;;  %s231_s12 = int_to_ptr.vmem [resolvable:$true] %s1251_s12 }
  0x13   : > { %p1245_p11 = pnand %p895_p9, %p1490_p1  ;;  %p961_p12 = scmp.ne.s32.totalorder %s1484_s1, %s960_s15 }
  0x14   : > { %p967_p5 = scmp.lt.u32.totalorder %s960_s15, %s1484_s1 }
  0x15   : > { %p1261_p13 = pneg %p1245_p11 }
  0x17   : > { %p963_p0 = pnand %p1261_p13, %p961_p12 }
  0x19   : > { %p964_p3 = pneg %p963_p0 }
  0x1b   : > { %p969_p7 = pnand %p967_p5, %p964_p3 }
  0x1d   : > { %972 = shalt.err (!%p969_p7)
}
  0x1e   : > { %s973_s26 = scalar_lea.vmem %s1238_s7, 6144  ;;  %p981_p2 = scmp.lt.s32.totalorder %s1238_s7, %s1238_s7 }
  0x1f   : > { %p974_p9 = scmp.ne.s32.totalorder %s1238_s7, %s973_s26  ;;  %p982_p6 = scmp.lt.s32.totalorder %s973_s26, %s973_s26 }
  0x21   : > { %p976_p10 = pnand %p974_p9, %p1261_p13  ;;  %p983_p12 = por %p982_p6, %p981_p2 }
  0x23   : > { %p977_p1 = pneg %p976_p10 }
  0x25   : > { %p984_p0 = pnand %p983_p12, %p977_p1 }
  0x27   : > { %987 = shalt.err (!%p984_p0)
}
  0x28   : > { %s1153_s30 = smov 256   ;;  %s1154_s9 = smov 16  }
  0x29   : > { %898 = dma.hbm_to_vmem [thread:$0]  (!%p1245_p11), %s1484_s1, 6144, %s1238_s7, [#allocation6], %s1153_s30, %s1153_s30, %s1154_s9  }
  0x2a   : > { %s988_s16 = scalar_lea.hbm %s1486_s3, 8192 }
  0x2b   : > { %p989_p1 = scmp.ne.s32.totalorder %s1486_s3, %s988_s16  ;;  %p995_p10 = scmp.lt.u32.totalorder %s988_s16, %s1486_s3 }
  0x2d   : > { %p991_p2 = pnand %p989_p1, %p1261_p13 }
  0x2f   : > { %p992_p6 = pneg %p991_p2 }
  0x31   : > { %p997_p3 = pnand %p995_p10, %p992_p6 }
  0x33   : > { %1000 = shalt.err (!%p997_p3)
}
  0x34   : > { %s1001_s7 = scalar_lea.vmem %s1249_s10, 8192  ;;  %p1009_p12 = scmp.lt.s32.totalorder %s1249_s10, %s1249_s10 }
  0x35   : > { %p1002_p5 = scmp.ne.s32.totalorder %s1249_s10, %s1001_s7  ;;  %p1010_p0 = scmp.lt.s32.totalorder %s1001_s7, %s1001_s7 }
  0x37   : > { %p1004_p7 = pnand %p1002_p5, %p1261_p13  ;;  %p1011_p1 = por %p1010_p0, %p1009_p12 }
  0x39   : > { %p1005_p9 = pneg %p1004_p7 }
  0x3b   : > { %p1012_p2 = pnand %p1011_p1, %p1005_p9 }
  0x3d   : > { %1015 = shalt.err (!%p1012_p2)
}
  0x3e   : > { %901 = dma.hbm_to_vmem [thread:$0]  (!%p1245_p11), %s1486_s3, 8192, %s1249_s10, [#allocation6], %s1153_s30, %s1153_s30, %s1154_s9  }
  0x3f   : > { %s1016_s16 = scalar_lea.hbm %s1488_s5, 512 }
  0x40   : > { %p1017_p6 = scmp.ne.s32.totalorder %s1488_s5, %s1016_s16  ;;  %p1023_p5 = scmp.lt.u32.totalorder %s1016_s16, %s1488_s5 }
  0x42   : > { %p1019_p10 = pnand %p1017_p6, %p1261_p13 }
  0x44   : > { %p1020_p3 = pneg %p1019_p10 }
  0x46   : > { %p1025_p7 = pnand %p1023_p5, %p1020_p3 }
  0x48   : > { %1028 = shalt.err (!%p1025_p7)
}
  0x49   : > { %s1029_s7 = scalar_lea.vmem %s231_s12, 512  ;;  %p1037_p1 = scmp.lt.s32.totalorder %s231_s12, %s231_s12 }
  0x4a   : > { %p1030_p9 = scmp.ne.s32.totalorder %s231_s12, %s1029_s7  ;;  %p1038_p2 = scmp.lt.s32.totalorder %s1029_s7, %s1029_s7 }
  0x4c   : > { %p1032_p12 = pnand %p1030_p9, %p1261_p13  ;;  %p1039_p4 = por %p1038_p2, %p1037_p1 }
  0x4e   : > { %p1033_p0 = pneg %p1032_p12 }
  0x50   : > { %p1040_p8 = pnand %p1039_p4, %p1033_p0 }
  0x52   : > { %1043 = shalt.err (!%p1040_p8)
}
  0x53   : > { %904 = dma.hbm_to_vmem [thread:$0]  (!%p1245_p11), %s1488_s5, 512, %s231_s12, [#allocation9], %s1153_s30, %s1153_s30, %s1154_s9  }
  0x54   : > { %s1334_s18 = sadd.s32 1, %s1148_s24   ;;  %s31_s13 = sadd.s32 1, %s1144_s23 }
  0x55   : > { %s28_s8 = ssub.s32 %s1148_s24, %s1334_s18  ;;  %p38_p8 = scmp.ne.s32.totalorder %s1144_s23, %s1140_s22 }
  0x56   : > { %p29_p4 = scmp.eq.s32.totalorder %s28_s8, 0  ;;  %p39_p13 = scmp.eq.s32.totalorder %s1148_s24, 0 }
  0x57   : > { %p916_p6 = scmp.lt.s32.totalorder %s1148_s24, 2  ;;  %p1498_p3 = scmp.eq.s32.totalorder %s1215_s25, 1 }
  0x58   : > { %s1344_s14 = scalar_select %p29_p4, %s1144_s23, %s31_s13  }
  0x59   : > { %p40_p10 = por %p39_p13, %p38_p8  ;;  %p1348_p5 = por %p1498_p3, %p38_p8 }
  0x5a   : > { %s244_s16 = sand.u32 1, %s1144_s23   ;;  %s765_s17 = sshll.u32 %s1148_s24, 9 }
  0x5b   : > { %s749_s12 = sshll.u32 %s244_s16, 5  ;;  %s1357_s26 = scalar_lea.hbm %s1483_s0, %s765_s17 }
  0x5c   : > { %s248_s7 = scalar_lea.vmem [#allocation2], %s749_s12  ;;  %p1359_p11 = pnand %p916_p6, %p40_p10 }
  0x5d   : > { %s255_s10 = sshll.u32 %s248_s7, 4  ;;  %s1365_s8 = scalar_lea.sflag [#allocation3], %s244_s16  ;;  %s1363_s10 = int_to_ptr.vmem [resolvable:$true] %s255_s10 }
  0x5e   : > { %s1044_s13 = scalar_lea.hbm %s1357_s26, 512  ;;  %p1046_p9 = pneg %p1359_p11 }
  0x5f   : > { %p1045_p7 = scmp.ne.s32.totalorder %s1357_s26, %s1044_s13  ;;  %s1049_s19 = scalar_lea.hbm %s1483_s0, 1024 }
  0x60   : > { %p1050_p1 = scmp.lt.u32.totalorder %s1357_s26, %s1483_s0  ;;  %p1051_p2 = scmp.lt.u32.totalorder %s1049_s19, %s1044_s13 }
  0x61   : > { %p1047_p12 = pnand %p1046_p9, %p1045_p7  ;;  %p1053_p8 = scmp.lt.u32.totalorder %s1044_s13, %s1357_s26 }
  0x62   : > { %p1052_p4 = por %p1051_p2, %p1050_p1 }
  0x63   : > { %p1048_p0 = pneg %p1047_p12 }
  0x64   : > { %p1054_p13 = por %p1053_p8, %p1052_p4 }
  0x66   : > { %p1055_p6 = pnand %p1054_p13, %p1048_p0 }
  0x68   : > { %1058 = shalt.err (!%p1055_p6)
}
  0x69   : > { %s1059_s16 = scalar_lea.vmem %s1363_s10, 512  ;;  %s1155_s17 = smov [#allocation2]  }
  0x6a   : > { %p1060_p10 = scmp.ne.s32.totalorder %s1363_s10, %s1059_s16  ;;  %s1064_s12 = sshll.u32 %s1155_s17, 4  ;;  %s1065_s12 = int_to_ptr.vmem [resolvable:$false] %s1064_s12 }
  0x6b   : > { %s1066_s20 = scalar_lea.vmem %s1065_s12, 1024  ;;  %p1067_p12 = scmp.lt.s32.totalorder %s1363_s10, %s1065_s12 }
  0x6c   : > { %p1062_p3 = pnand %p1060_p10, %p1046_p9  ;;  %p1068_p1 = scmp.lt.s32.totalorder %s1066_s20, %s1059_s16 }
  0x6e   : > { %p1063_p7 = pneg %p1062_p3  ;;  %p1069_p2 = por %p1068_p1, %p1067_p12 }
  0x70   : > { %p1070_p4 = pnand %p1069_p2, %p1063_p7 }
  0x72   : > { %1073 = shalt.err (!%p1070_p4)
}
  0x73   : > { %908 = dma.hbm_to_vmem [thread:$0]  (!%p1359_p11), %s1357_s26, 512, %s1363_s10, %s1365_s8, %s1153_s30, %s1153_s30, %s1154_s9  }
  0x74   : > { %p1501_p9 = scmp.ne.s32.totalorder %s1495_s29, 0 }
  0x75   : > { %s1399_s13 = sand.u32 (!%p1501_p9), 1, %s1140_s22   ;;  %p1502_p0 = scmp.ne.s32.totalorder (!%p1501_p9), %s1493_s27, 0 }
  0x76   : > { %267 = sbr.rel (%p1501_p9) target bundleno = 636 (0x27c), region = 44  ;;  %s753_s19 = sshll.u32 (!%p1501_p9), %s1399_s13, 5 }
  0x77   : > { %s270_s7 = scalar_lea.sflag (!%p1501_p9), [#allocation3], %s1399_s13  ;;  %s1405_s11 = scalar_lea.vmem (!%p1501_p9), [#allocation2], %s753_s19 }
  0x7d   : > { %1119 = dma.done.wait (%p1502_p0), %s270_s7, 512  }
  0x7e   : > { %1121 = vsyncadd (%p1502_p0), %s270_s7, 4294966784  ;;  %p1503_p11 = scmp.eq.s32.totalorder %s1215_s25, 0 }
  0x80   : > { %1123 = dma.done.wait (%p1503_p11), [#allocation6], 14336   ;;  %p1504_p8 = pmov %p1503_p11 }
  0x82   : > { %1125 = vsyncadd (%p1504_p8), [#allocation6], 4294952960  ;;  %p1505_p13 = pmov %p1504_p8 }
  0x83   : > { %p1506_p6 = pmov %p1504_p8 }
  0x84   : > { %1127 = dma.done.wait (%p1505_p13), [#allocation9], 512  }
  0x85   : > { %1129 = vsyncadd (%p1506_p6), [#allocation9], 4294966784  ;;  %v319_v0 = vld [vmem:[#allocation5 + $0x8] sm:$0xff]  ;;  %v321_v1 = vld [vmem:[#allocation5 + $0x18] sm:$0xff]  ;;  %vm378_vm0 = vcmask 523264   ;;  %s313_s26 = scalar_lea.vmem [#allocation10], %s753_s19 }
  0x86   : > { %v318_v2 = vld [vmem:[#allocation5] sm:$0xff]  ;;  %v767_v3 = vpack.c.bf16 %v321_v1, %v319_v0  ;;  %v320_v4 = vld [vmem:[#allocation5 + $0x10] sm:$0xff]  ;;  %v323_v5 = vld [vmem:[#allocation5 + $0x28] sm:$0xff]  ;;  %s641_s10 = sshll.u32 %s313_s26, 4  ;;  %s766_s8 = sshll.u32 %s1215_s25, 9  ;;  %s1434_s10 = int_to_ptr.vmem [resolvable:$true] %s641_s10 }
  0x87   : > { %v325_v6 = vld [vmem:[#allocation5 + $0x38] sm:$0xff]  ;;  %v769_v7 = vpack.c.bf16 %v320_v4, %v318_v2  ;;  %v322_v9 = vld [vmem:[#allocation5 + $0x20] sm:$0xff]  ;;  %v324_v10 = vld [vmem:[#allocation5 + $0x30] sm:$0xff]  ;;  %s1439_s12 = scalar_lea.hbm %s1489_s6, %s766_s8  ;;  %s628_s25 = scalar_lea.sflag [#allocation4], %s1399_s13 }
  0x88   : > { %v771_v8 = vpack.c.bf16 %v325_v6, %v323_v5  ;;  %v327_v11 = vld [vmem:[#allocation5 + $0x48] sm:$0xff]  ;;  %768 = vmatprep.subr.bf16.mxu0 %v767_v3  ;;  %v329_v12 = vld [vmem:[#allocation5 + $0x58] sm:$0xff]  ;;  %v773_v13 = vpack.c.bf16 %v324_v10, %v322_v9  ;;  %v326_v15 = vld [vmem:[#allocation5 + $0x40] sm:$0xff]  ;;  %s1074_s20 = scalar_lea.vmem %s1434_s10, 512  ;;  %s1156_s19 = smov [#allocation10]  }
  0x89   : > { %770 = vmatpush1.bf16.msra.mxu0 %v769_v7  ;;  %v775_v14 = vpack.c.bf16 %v329_v12, %v327_v11  ;;  %v328_v16 = vld [vmem:[#allocation5 + $0x50] sm:$0xff]  ;;  %v331_v17 = vld [vmem:[#allocation5 + $0x68] sm:$0xff]  ;;  %v333_v18 = vld [vmem:[#allocation5 + $0x78] sm:$0xff]  ;;  %p1075_p10 = scmp.ne.s32.totalorder %s1434_s10, %s1074_s20  ;;  %s1078_s7 = sshll.u32 %s1156_s19, 4  ;;  %s1079_s7 = int_to_ptr.vmem [resolvable:$false] %s1078_s7 }
  0x8a   : > { %772 = vmatprep.subr.bf16.mxu0 %v771_v8  ;;  %v777_v19 = vpack.c.bf16 %v328_v16, %v326_v15  ;;  %v779_v20 = vpack.c.bf16 %v333_v18, %v331_v17  ;;  %v330_v21 = vld [vmem:[#allocation5 + $0x60] sm:$0xff]  ;;  %v332_v22 = vld [vmem:[#allocation5 + $0x70] sm:$0xff]  ;;  %v335_v23 = vld [vmem:[#allocation5 + $0x88] sm:$0xff]  ;;  %p1081_p12 = scmp.lt.s32.totalorder %s1434_s10, %s1079_s7 }
  0x8b   : > { %v337_v24 = vld [vmem:[#allocation5 + $0x98] sm:$0xff]  ;;  %v781_v25 = vpack.c.bf16 %v332_v22, %v330_v21  ;;  %v334_v27 = vld [vmem:[#allocation5 + $0x80] sm:$0xff]  ;;  %v336_v28 = vld [vmem:[#allocation5 + $0x90] sm:$0xff]  ;;  %p1076_p3 = pnand %p1075_p10, %p1348_p5 }
  0x8c   : > { %v783_v26 = vpack.c.bf16 %v337_v24, %v335_v23  ;;  %v339_v29 = vld [vmem:[#allocation5 + $0xa8] sm:$0xff]  ;;  %v341_v30 = vld [vmem:[#allocation5 + $0xb8] sm:$0xff]  ;;  %v338_v31 = vld [vmem:[#allocation5 + $0xa0] sm:$0xff]  ;;  %v785_v32 = vpack.c.bf16 %v336_v28, %v334_v27 }
  0x8d   : > { %774 = vmatpush1.bf16.msra.mxu0 %v773_v13  ;;  %v340_v33 = vld [vmem:[#allocation5 + $0xb0] sm:$0xff]  ;;  %v343_v34 = vld [vmem:[#allocation5 + $0xc8] sm:$0xff]  ;;  %v787_v36 = vpack.c.bf16 %v341_v30, %v339_v29  ;;  %v345_v37 = vld [vmem:[#allocation5 + $0xd8] sm:$0xff]  ;;  %p1077_p7 = pneg %p1076_p3 }
  0x8e   : > { %776 = vmatprep.subr.bf16.mxu0 %v775_v14  ;;  %v315_v35 = vld [vmem:[%s1405_s11 + $0x8] sm:$0xff]  ;;  %v465_v39 = vld [vmem:[#allocation7 + $0x18] sm:$0xff]  ;;  %v462_v41 = vld [vmem:[#allocation7] sm:$0xff]  ;;  %v789_v48 = vpack.c.bf16 %v340_v33, %v338_v31  ;;  %v791_v52 = vpack.c.bf16 %v345_v37, %v343_v34 }
  0x8f   : > { %758 = vmatprep.mubr.msk.f32.mxu0 %vm378_vm0, %v315_v35  ;;  %v463_v38 = vld [vmem:[#allocation7 + $0x8] sm:$0xff]  ;;  %v464_v42 = vld [vmem:[#allocation7 + $0x10] sm:$0xff]  ;;  %v469_v45 = vld [vmem:[#allocation7 + $0x38] sm:$0xff] }
  0x90   : > { %v815_v40 = vpack.c.bf16 %v465_v39, %v463_v38  ;;  %v467_v43 = vld [vmem:[#allocation7 + $0x28] sm:$0xff]  ;;  %v817_v44 = vpack.c.bf16 %v464_v42, %v462_v41  ;;  %v466_v46 = vld [vmem:[#allocation7 + $0x20] sm:$0xff]  ;;  %v468_v47 = vld [vmem:[#allocation7 + $0x30] sm:$0xff] }
  0x91   : > { %778 = vmatpush1.bf16.msra.mxu0 %v777_v19  ;;  %v819_v49 = vpack.c.bf16 %v469_v45, %v467_v43  ;;  %v471_v50 = vld [vmem:[#allocation7 + $0x48] sm:$0xff]  ;;  %v473_v51 = vld [vmem:[#allocation7 + $0x58] sm:$0xff]  ;;  %v342_v53 = vld [vmem:[#allocation5 + $0xc0] sm:$0xff]  ;;  %v821_v56 = vpack.c.bf16 %v468_v47, %v466_v46 }
  0x92   : > { %780 = vmatprep.subr.bf16.mxu0 %v779_v20  ;;  %816 = vmatprep.subr.bf16.mxu1 %v815_v40  ;;  %v344_v54 = vld [vmem:[#allocation5 + $0xd0] sm:$0xff]  ;;  %v347_v55 = vld [vmem:[#allocation5 + $0xe8] sm:$0xff]  ;;  %v349_v57 = vld [vmem:[#allocation5 + $0xf8] sm:$0xff]  ;;  %v823_v58 = vpack.c.bf16 %v473_v51, %v471_v50 }
  0x93   : > { %818 = vmatpush1.bf16.msra.mxu1 %v817_v44  ;;  %v470_v59 = vld [vmem:[#allocation7 + $0x40] sm:$0xff]  ;;  %v472_v60 = vld [vmem:[#allocation7 + $0x50] sm:$0xff]  ;;  %v475_v61 = vld [vmem:[#allocation7 + $0x68] sm:$0xff]  ;;  %v793_v63 = vpack.c.bf16 %v344_v54, %v342_v53  ;;  %v795_v0 = vpack.c.bf16 %v349_v57, %v347_v55 }
  0x94   : > { %820 = vmatprep.subr.bf16.mxu1 %v819_v49  ;;  %v477_v62 = vld [vmem:[#allocation7 + $0x78] sm:$0xff]  ;;  %v346_v1 = vld [vmem:[#allocation5 + $0xe0] sm:$0xff]  ;;  %v348_v2 = vld [vmem:[#allocation5 + $0xf0] sm:$0xff]  ;;  %v825_v4 = vpack.c.bf16 %v472_v60, %v470_v59 }
  0x95   : > { %782 = vmatpush1.bf16.msra.mxu0 %v781_v25  ;;  %v351_v3 = vld [vmem:[#allocation5 + $0x108] sm:$0xff]  ;;  %v353_v5 = vld [vmem:[#allocation5 + $0x118] sm:$0xff]  ;;  %v827_v6 = vpack.c.bf16 %v477_v62, %v475_v61  ;;  %v474_v7 = vld [vmem:[#allocation7 + $0x60] sm:$0xff]  ;;  %v797_v11 = vpack.c.bf16 %v348_v2, %v346_v1 }
  0x96   : > { %784 = vmatprep.subr.bf16.mxu0 %v783_v26  ;;  %v476_v8 = vld [vmem:[#allocation7 + $0x70] sm:$0xff]  ;;  %v479_v9 = vld [vmem:[#allocation7 + $0x88] sm:$0xff]  ;;  %v481_v10 = vld [vmem:[#allocation7 + $0x98] sm:$0xff]  ;;  %v799_v12 = vpack.c.bf16 %v353_v5, %v351_v3 }
  0x97   : > { %822 = vmatpush1.bf16.msra.mxu1 %v821_v56  ;;  %v350_v13 = vld [vmem:[#allocation5 + $0x100] sm:$0xff]  ;;  %v352_v14 = vld [vmem:[#allocation5 + $0x110] sm:$0xff]  ;;  %v355_v15 = vld [vmem:[#allocation5 + $0x128] sm:$0xff]  ;;  %v829_v16 = vpack.c.bf16 %v476_v8, %v474_v7  ;;  %v831_v18 = vpack.c.bf16 %v481_v10, %v479_v9 }
  0x98   : > { %824 = vmatprep.subr.bf16.mxu1 %v823_v58  ;;  %v357_v17 = vld [vmem:[#allocation5 + $0x138] sm:$0xff]  ;;  %v478_v19 = vld [vmem:[#allocation7 + $0x80] sm:$0xff]  ;;  %v480_v20 = vld [vmem:[#allocation7 + $0x90] sm:$0xff]  ;;  %v801_v23 = vpack.c.bf16 %v352_v14, %v350_v13 }
  0x99   : > { %786 = vmatpush1.bf16.msra.mxu0 %v785_v32  ;;  %v483_v21 = vld [vmem:[#allocation7 + $0xa8] sm:$0xff]  ;;  %v485_v22 = vld [vmem:[#allocation7 + $0xb8] sm:$0xff]  ;;  %v803_v24 = vpack.c.bf16 %v357_v17, %v355_v15  ;;  %v354_v25 = vld [vmem:[#allocation5 + $0x120] sm:$0xff]  ;;  %v833_v28 = vpack.c.bf16 %v480_v20, %v478_v19 }
  0x9a   : > { %788 = vmatprep.subr.bf16.mxu0 %v787_v36  ;;  %v356_v26 = vld [vmem:[#allocation5 + $0x130] sm:$0xff]  ;;  %v359_v27 = vld [vmem:[#allocation5 + $0x148] sm:$0xff]  ;;  %v361_v29 = vld [vmem:[#allocation5 + $0x158] sm:$0xff]  ;;  %v835_v30 = vpack.c.bf16 %v485_v22, %v483_v21 }
  0x9b   : > { %826 = vmatpush1.bf16.msra.mxu1 %v825_v4  ;;  %v482_v31 = vld [vmem:[#allocation7 + $0xa0] sm:$0xff]  ;;  %v484_v32 = vld [vmem:[#allocation7 + $0xb0] sm:$0xff]  ;;  %v487_v33 = vld [vmem:[#allocation7 + $0xc8] sm:$0xff]  ;;  %v805_v35 = vpack.c.bf16 %v356_v26, %v354_v25  ;;  %v807_v36 = vpack.c.bf16 %v361_v29, %v359_v27 }
  0x9c   : > { %828 = vmatprep.subr.bf16.mxu1 %v827_v6  ;;  %v489_v34 = vld [vmem:[#allocation7 + $0xd8] sm:$0xff]  ;;  %v358_v37 = vld [vmem:[#allocation5 + $0x140] sm:$0xff]  ;;  %v360_v38 = vld [vmem:[#allocation5 + $0x150] sm:$0xff]  ;;  %v837_v40 = vpack.c.bf16 %v484_v32, %v482_v31 }
  0x9d   : > { %790 = vmatpush1.bf16.msra.mxu0 %v789_v48  ;;  %v363_v39 = vld [vmem:[#allocation5 + $0x168] sm:$0xff]  ;;  %v365_v41 = vld [vmem:[#allocation5 + $0x178] sm:$0xff]  ;;  %v839_v42 = vpack.c.bf16 %v489_v34, %v487_v33  ;;  %v486_v43 = vld [vmem:[#allocation7 + $0xc0] sm:$0xff]  ;;  %v809_v47 = vpack.c.bf16 %v360_v38, %v358_v37 }
  0x9e   : > { %792 = vmatprep.subr.bf16.mxu0 %v791_v52  ;;  %v488_v44 = vld [vmem:[#allocation7 + $0xd0] sm:$0xff]  ;;  %v491_v45 = vld [vmem:[#allocation7 + $0xe8] sm:$0xff]  ;;  %v493_v46 = vld [vmem:[#allocation7 + $0xf8] sm:$0xff]  ;;  %v811_v48 = vpack.c.bf16 %v365_v41, %v363_v39 }
  0x9f   : > { %830 = vmatpush1.bf16.msra.mxu1 %v829_v16  ;;  %v362_v49 = vld [vmem:[#allocation5 + $0x160] sm:$0xff]  ;;  %v364_v50 = vld [vmem:[#allocation5 + $0x170] sm:$0xff]  ;;  %v841_v51 = vpack.c.bf16 %v488_v44, %v486_v43  ;;  %v843_v52 = vpack.c.bf16 %v493_v46, %v491_v45  ;;  %v495_v55 = vld [vmem:[#allocation7 + $0x108] sm:$0xff]  ;;  %v368_v44 = vlaneseq }
  0xa0   : > { %832 = vmatprep.subr.bf16.mxu1 %v831_v18  ;;  %v490_v53 = vld [vmem:[#allocation7 + $0xe0] sm:$0xff]  ;;  %v492_v54 = vld [vmem:[#allocation7 + $0xf0] sm:$0xff]  ;;  %v497_v56 = vld [vmem:[#allocation7 + $0x118] sm:$0xff]  ;;  %v813_v57 = vpack.c.bf16 %v364_v50, %v362_v49 }
  0xa1   : > { %794 = vmatpush1.bf16.msra.mxu0 %v793_v63  ;;  %v845_v58 = vpack.c.bf16 %v492_v54, %v490_v53  ;;  %v847_v59 = vpack.c.bf16 %v497_v56, %v495_v55  ;;  %v494_v60 = vld [vmem:[#allocation7 + $0x100] sm:$0xff]  ;;  %v496_v61 = vld [vmem:[#allocation7 + $0x110] sm:$0xff]  ;;  %v499_v62 = vld [vmem:[#allocation7 + $0x128] sm:$0xff]  ;;  %v369_v45 = vshrl.u32 %v368_v44, 7 }
  0xa2   : > { %796 = vmatprep.subr.bf16.mxu0 %v795_v0  ;;  %v501_v63 = vld [vmem:[#allocation7 + $0x138] sm:$0xff]  ;;  %v314_v0 = vld [vmem:[%s1405_s11] sm:$0xff]  ;;  %v849_v2 = vpack.c.bf16 %v496_v61, %v494_v60  ;;  %v500_v5 = vld [vmem:[#allocation7 + $0x130] sm:$0xff] }
  0xa3   : > { %834 = vmatpush1.bf16.msra.mxu1 %v833_v28  ;;  %v317_v1 = vld [vmem:[%s1405_s11 + $0x18] sm:$0xff]  ;;  %v851_v3 = vpack.c.bf16 %v501_v63, %v499_v62  ;;  %v498_v4 = vld [vmem:[#allocation7 + $0x120] sm:$0xff]  ;;  %v503_v6 = vld [vmem:[#allocation7 + $0x148] sm:$0xff]  ;;  %v374_v46 = vsub.s32 1, %v369_v45 }
  0xa4   : > { %836 = vmatprep.subr.bf16.mxu1 %v835_v30  ;;  %v505_v7 = vld [vmem:[#allocation7 + $0x158] sm:$0xff]  ;;  %v316_v8 = vld [vmem:[%s1405_s11 + $0x10] sm:$0xff]  ;;  %v853_v9 = vpack.c.bf16 %v500_v5, %v498_v4  ;;  %v507_v13 = vld [vmem:[#allocation7 + $0x168] sm:$0xff]  ;;  %s1080_s11 = scalar_lea.vmem %s1079_s7, 1024 }
  0xa5   : > { %798 = vmatpush1.bf16.msra.mxu0 %v797_v11  ;;  %v855_v10 = vpack.c.bf16 %v505_v7, %v503_v6  ;;  %v502_v11 = vld [vmem:[#allocation7 + $0x140] sm:$0xff]  ;;  %v509_v14 = vld [vmem:[#allocation7 + $0x178] sm:$0xff]  ;;  %v508_v18 = vld [vmem:[#allocation7 + $0x170] sm:$0xff]  ;;  %p1082_p1 = scmp.lt.s32.totalorder %s1080_s11, %s1074_s20 }
  0xa6   : > { %800 = vmatprep.subr.bf16.mxu0 %v799_v12  ;;  %v504_v12 = vld [vmem:[#allocation7 + $0x150] sm:$0xff]  ;;  %v859_v16 = vpack.c.bf16 %v509_v14, %v507_v13  ;;  %v506_v17 = vld [vmem:[#allocation7 + $0x160] sm:$0xff]  ;;  %v511_v19 = vld [vmem:[#allocation7 + $0x188] sm:$0xff] }
  0xa7   : > { %838 = vmatpush1.bf16.msra.mxu1 %v837_v40  ;;  %v857_v15 = vpack.c.bf16 %v504_v12, %v502_v11  ;;  %v513_v20 = vld [vmem:[#allocation7 + $0x198] sm:$0xff]  ;;  %v861_v21 = vpack.c.bf16 %v508_v18, %v506_v17  ;;  %v515_v25 = vld [vmem:[#allocation7 + $0x1a8] sm:$0xff]  ;;  %v514_v29 = vld [vmem:[#allocation7 + $0x1a0] sm:$0xff]  ;;  %p1083_p2 = por %p1082_p1, %p1081_p12 }
  0xa8   : > { %840 = vmatprep.subr.bf16.mxu1 %v839_v42  ;;  %v863_v22 = vpack.c.bf16 %v513_v20, %v511_v19  ;;  %v517_v26 = vld [vmem:[#allocation7 + $0x1b8] sm:$0xff]  ;;  %v516_v30 = vld [vmem:[#allocation7 + $0x1b0] sm:$0xff]  ;;  %v519_v31 = vld [vmem:[#allocation7 + $0x1c8] sm:$0xff] }
  0xa9   : > { %802 = vmatpush1.bf16.msra.mxu0 %v801_v23  ;;  %v510_v23 = vld [vmem:[#allocation7 + $0x180] sm:$0xff]  ;;  %v867_v28 = vpack.c.bf16 %v517_v26, %v515_v25  ;;  %v521_v32 = vld [vmem:[#allocation7 + $0x1d8] sm:$0xff]  ;;  %v869_v33 = vpack.c.bf16 %v516_v30, %v514_v29  ;;  %v523_v38 = vld [vmem:[#allocation7 + $0x1e8] sm:$0xff]  ;;  %p1084_p4 = pnand %p1083_p2, %p1077_p7 }
  0xaa   : > { %804 = vmatprep.subr.bf16.mxu0 %v803_v24  ;;  %v512_v24 = vld [vmem:[#allocation7 + $0x190] sm:$0xff]  ;;  %v871_v34 = vpack.c.bf16 %v521_v32, %v519_v31  ;;  %v525_v39 = vld [vmem:[#allocation7 + $0x1f8] sm:$0xff]  ;;  %v522_v41 = vld [vmem:[#allocation7 + $0x1e0] sm:$0xff] }
  0xab   : > { %842 = vmatpush1.bf16.msra.mxu1 %v841_v51  ;;  %v865_v27 = vpack.c.bf16 %v512_v24, %v510_v23  ;;  %v875_v40 = vpack.c.bf16 %v525_v39, %v523_v38  ;;  %v524_v42 = vld [vmem:[#allocation7 + $0x1f0] sm:$0xff]  ;;  %v615_v63 = vld [vmem:[#allocation8] sm:$0xff] }
  0xac   : > { %844 = vmatprep.subr.bf16.mxu1 %v843_v52  ;;  %v877_v43 = vpack.c.bf16 %v524_v42, %v522_v41  ;;  %v617_v7 = vld [vmem:[#allocation8 + $0x10] sm:$0xff] }
  0xad   : > { %806 = vmatpush1.bf16.msra.mxu0 %v805_v35  ;;  %v518_v35 = vld [vmem:[#allocation7 + $0x1c0] sm:$0xff] }
  0xae   : > { %808 = vmatprep.subr.bf16.mxu0 %v807_v36  ;;  %v520_v36 = vld [vmem:[#allocation7 + $0x1d0] sm:$0xff] }
  0xaf   : > { %846 = vmatpush1.bf16.msra.mxu1 %v845_v58  ;;  %v873_v37 = vpack.c.bf16 %v520_v36, %v518_v35 }
  0xb0   : > { %848 = vmatprep.subr.bf16.mxu1 %v847_v59  ;;  %v526_v59 = vld [vmem:[%s1487_s4] sm:$0x3] }
  0xb1   : > { %810 = vmatpush1.bf16.msra.mxu0 %v809_v47  ;;  %v366_v47 = vld [vmem:[%s1485_s2] sm:$0x3]  ;;  %v535_v61 = vrot.slane %v526_v59, %v374_v46 }
  0xb2   : > { %812 = vmatprep.subr.bf16.mxu0 %v811_v48  ;;  %v370_v48 = vsub.s32 0, %v369_v45  ;;  %v375_v49 = vrot.slane %v366_v47, %v374_v46 }
  0xb3   : > { %850 = vmatpush1.bf16.msra.mxu1 %v849_v2  ;;  %v616_v2 = vld [vmem:[#allocation8 + $0x8] sm:$0xff] }
  0xb4   : > { %852 = vmatprep.subr.bf16.mxu1 %v851_v3  ;;  %v371_v50 = vrot.slane %v366_v47, %v370_v48  ;;  %v531_v60 = vrot.slane %v526_v59, %v370_v48 }
  0xb5   : > { %814 = vmatpush1.bf16.msra.mxu0 %v813_v57 }
  0xb7   : > { %854 = vmatpush1.bf16.msra.mxu1 %v853_v9 }
  0xb8   : > { %450 = vmatmul.mubr.f32.vlgmr.msra.gmra.mrb[0].mxu0 %v314_v0  ;;  %856 = vmatprep.subr.bf16.mxu1 %v855_v10  ;;  %v618_v10 = vld [vmem:[#allocation8 + $0x18] sm:$0xff] }
  0xb9   : > { %759 = vmatprep.mubr.msk.f32.mxu0 %vm378_vm0, %v317_v1 }
  0xbb   : > { %858 = vmatpush1.bf16.msra.mxu1 %v857_v15 }
  0xbc   : > { %456 = vmatmul.mubr.f32.gmra.mrb[2].mxu0 %v316_v8  ;;  %860 = vmatprep.subr.bf16.mxu1 %v859_v16 }
  0xbf   : > { %862 = vmatpush1.bf16.msra.mxu1 %v861_v21 }
  0xc0   : > { %864 = vmatprep.subr.bf16.mxu1 %v863_v22 }
  0xc3   : > { %866 = vmatpush1.bf16.msra.mxu1 %v865_v27 }
  0xc4   : > { %868 = vmatprep.subr.bf16.mxu1 %v867_v28 }
  0xc7   : > { %870 = vmatpush1.bf16.msra.mxu1 %v869_v33 }
  0xc8   : > { %872 = vmatprep.subr.bf16.mxu1 %v871_v34 }
  0xcb   : > { %874 = vmatpush1.bf16.msra.mxu1 %v873_v37 }
  0xcc   : > { %876 = vmatprep.subr.bf16.mxu1 %v875_v40 }
  0xcf   : > { %878 = vmatpush1.bf16.msra.mxu1 %v877_v43 }
 0x18b   : > { %v451_v51 = vpop.f32.mrb[0].mxu0 }
 0x18c   : > { %v453_v52 = vpop.f32.mrb[1].mxu0  ;;  %v452_v54 = vadd.f32 %v451_v51, %v371_v50 }
 0x18d   : > { %v454_v53 = vadd.f32 %v453_v52, %v375_v49 }
 0x18f   : > { %v457_v55 = vpop.f32.mrb[2].mxu0  ;;  %602 = vmatprep.mubr.f32.mxu1 %v454_v53 }
 0x190   : > { %v459_v56 = vpop.f32.mrb[3].mxu0  ;;  %603 = vmatmul.mubr.f32.vlgmr.msra.gmra.mrb[0].mxu1 %v452_v54  ;;  %v458_v58 = vadd.f32 %v457_v55, %v371_v50 }
 0x191   : > { %v460_v57 = vadd.f32 %v459_v56, %v375_v49 }
 0x193   : > { %608 = vmatprep.mubr.f32.mxu1 %v460_v57 }
 0x194   : > { %609 = vmatmul.mubr.f32.gmra.mrb[2].mxu1 %v458_v58 }
 0x263   : > { %v604_v62 = vpop.f32.mrb[0].mxu1 }
 0x264   : > { %v605_v0 = vadd.f32 %v604_v62, %v531_v60  ;;  %v606_v1 = vpop.f32.mrb[1].mxu1 }
 0x265   : > { %v607_v3 = vadd.f32 %v606_v1, %v535_v61 }
 0x266   : > { %v619_v4 = vadd.f32 %v615_v63, %v605_v0 }
 0x267   : > { %v620_v5 = vadd.f32 %v616_v2, %v607_v3  ;;  %v610_v6 = vpop.f32.mrb[2].mxu1 }
 0x268   : > { %623 = vst [vmem:[%s313_s26] sm:$0xff] %v619_v4  ;;  %v611_v8 = vadd.f32 %v610_v6, %v531_v60  ;;  %v612_v9 = vpop.f32.mrb[3].mxu1 }
 0x269   : > { %624 = vst [vmem:[%s313_s26 + $0x8] sm:$0xff] %v620_v5  ;;  %v613_v11 = vadd.f32 %v612_v9, %v535_v61 }
 0x26a   : > { %v621_v12 = vadd.f32 %v617_v7, %v611_v8 }
 0x26b   : > { %v622_v13 = vadd.f32 %v618_v10, %v613_v11 }
 0x26c   : > { %625 = vst [vmem:[%s313_s26 + $0x10] sm:$0xff] %v621_v12 }
 0x26d   : > { %626 = vst [vmem:[%s313_s26 + $0x18] sm:$0xff] %v622_v13 }
 0x26e   : > { %1087 = shalt.err (!%p1084_p4)
}
 0x26f   : > { %s1088_s27 = scalar_lea.hbm %s1439_s12, 512  ;;  %s1092_s9 = scalar_lea.hbm %s1489_s6, 1024 }
 0x270   : > { %p1089_p9 = scmp.ne.s32.totalorder %s1439_s12, %s1088_s27  ;;  %p1093_p8 = scmp.lt.u32.totalorder %s1439_s12, %s1489_s6 }
 0x271   : > { %p1094_p13 = scmp.lt.u32.totalorder %s1092_s9, %s1088_s27  ;;  %p1096_p10 = scmp.lt.u32.totalorder %s1088_s27, %s1439_s12 }
 0x272   : > { %p1090_p0 = pnand %p1089_p9, %p1348_p5 }
 0x273   : > { %p1095_p6 = por %p1094_p13, %p1093_p8 }
 0x274   : > { %p1091_p11 = pneg %p1090_p0 }
 0x275   : > { %p1097_p3 = por %p1096_p10, %p1095_p6 }
 0x277   : > { %p1098_p7 = pnand %p1097_p3, %p1091_p11 }
 0x279   : > { %1101 = shalt.err (!%p1098_p7)
}
 0x27a   : > { %s1157_s16 = smov 256   ;;  %s1158_s17 = smov 16  }
 0x27b   : > { %893 = dma.vmem_to_hbm [thread:$0]  (%p1348_p5), %s1434_s10, 512, %s1439_s12, %s628_s25, %s1157_s16, %s1157_s16, %s1158_s17  }
 0x27c PF: > { %s656_s20 = sand.u32 1, %s1136_s21   ;;  %p1507_p12 = scmp.ne.s32.totalorder %s1494_s28, 0 }
 0x27d   : > { %p1508_p1 = scmp.ge.s32.totalorder %s1148_s24, 2  ;;  %s657_s19 = scalar_lea.sflag [#allocation4], %s656_s20 }
 0x27f   : > { %p910_p2 = pnand %p1508_p1, %p1507_p12 }
 0x281   : > { %1131 = dma.done.wait (!%p910_p2), %s657_s19, 512  }
 0x282   : > { %1133 = vsyncadd (!%p910_p2), %s657_s19, 4294966784  ;;  %p21_p4 = scmp.ge.s32.totalorder %s1334_s18, 4   ;;  %s1509_s21 = smov %s1140_s22 }
 0x283   : > { %s1510_s22 = smov %s1144_s23  ;;  %s1511_s23 = smov %s1344_s14 }
 0x284   : > { %s1512_s24 = smov %s1334_s18  ;;  %23 = sbr.rel (!%p21_p4) target bundleno = 7 (0x7), region = 101 }
 0x28b   :  { %662 = vsyncpa [#allocation3], 1 }
 0x28c   :  { %664 = vsyncpa [#allocation3 + $0x1], 1 }
 0x28d   :  { %665 = vsyncpa [#allocation6], 1 }
 0x28e   :  { %666 = vsyncpa [#allocation9], 1 }
 0x28f   :  { %667 = vsyncpa [#allocation4], 1 }
 0x290   :  { %669 = vsyncpa [#allocation4 + $0x1], 1 }

</bundles_post_ra>
